<compile_context>
chip_gen: v6e
topology: v6e:2x2x1
jax: 0.10.0
libtpu: 0.0.40
codegen_flags: <defaults>
</compile_context>

<pallas_src>
import functools

import jax
import jax.numpy as jnp
from jax import lax
from jax.experimental import pallas as pl
from jax.experimental.pallas import tpu as pltpu

NEG_RATIO = 3.0
EPS = 1e-6
LANES = 128
# (1024, 128) fp32 tile = 512 KiB.  Measured elementwise roofline saturates
# around 512+ rows; double-buffered streams (2 in + up to 2 out) stay ~4 MiB,
# well inside v7x's 32 MiB scoped-VMEM default (and v5e/v6e defaults).
MAX_TILE_ROWS = 1024


def _choose_tiling(total):
    """Pick a sublane-aligned (tile_rows, 128) tiling for `total` elements."""
    rows = -(-total // LANES)
    rows = -(-rows // 8) * 8                       # multiple of 8 sublanes
    tile_rows = min(MAX_TILE_ROWS, rows)
    padded_rows = -(-rows // tile_rows) * tile_rows
    return tile_rows, padded_rows


def _pad_to(flat, padded_rows):
    pad = padded_rows * LANES - flat.shape[0]
    return jnp.pad(flat, (0, pad)).reshape(padded_rows, LANES)


# ----------------------------------------------------------------------------
# Kernel 1: elementwise BCE-with-logits + masked reductions.
#   outputs: negative-loss map, sum(positive_loss), sum(positive_mask)
#            [+ raw loss map only when return_origin=True]
# ----------------------------------------------------------------------------
def _bce_stats_kernel(total, pred_ref, gt_ref,
                      neg_ref, pos_sum_ref, pos_cnt_ref, *opt_loss_ref):
    i = pl.program_id(0)

    @pl.when(i == 0)
    def _():
        pos_sum_ref[...] = jnp.zeros_like(pos_sum_ref)
        pos_cnt_ref[...] = jnp.zeros_like(pos_cnt_ref)

    x = pred_ref[...]
    z = gt_ref[...]
    rows, cols = x.shape

    # Validity of this tile's elements (flat index < total), built in-kernel
    # instead of streaming a third full-size mask array from HBM.
    base = i * rows * cols
    gidx = (base
            + lax.broadcasted_iota(jnp.int32, (rows, cols), 0) * cols
            + lax.broadcasted_iota(jnp.int32, (rows, cols), 1))
    valid = gidx < total

    # binary_cross_entropy_with_logits, reduction='none':
    #   loss = max(x, 0) - x*z + log(1 + exp(-|x|))
    loss = jnp.maximum(x, 0.0) - x * z + jnp.log(1.0 + jnp.exp(-jnp.abs(x)))

    is_pos = jnp.logical_and(valid, z > 0.0)
    is_neg = jnp.logical_and(valid, z <= 0.0)
    pos_loss = jnp.where(is_pos, loss, 0.0)
    # Padded / positive entries must stay exactly 0 here: this array feeds the
    # ascending sort, and every true-negative BCE loss is strictly positive,
    # so the length-k ascending suffix is exactly the top-k negatives.
    neg_ref[...] = jnp.where(is_neg, loss, 0.0)

    pos_sum_ref[...] += jnp.sum(pos_loss, keepdims=True)
    pos_cnt_ref[...] += jnp.sum(is_pos.astype(jnp.float32), keepdims=True)

    if opt_loss_ref:                               # only when return_origin=True
        opt_loss_ref[0][...] = loss


def _bce_stats(pred2d, gt2d, total, tile_rows, want_loss):
    padded_rows = pred2d.shape[0]
    grid = (padded_rows // tile_rows,)
    tile_spec = pl.BlockSpec((tile_rows, LANES), lambda i: (i, 0))
    scal_spec = pl.BlockSpec((1, 1), lambda i: (0, 0))

    out_shape = [
        jax.ShapeDtypeStruct((padded_rows, LANES), jnp.float32),   # neg loss
        jax.ShapeDtypeStruct((1, 1), jnp.float32),                 # pos sum
        jax.ShapeDtypeStruct((1, 1), jnp.float32),                 # pos count
    ]
    out_specs = [tile_spec, scal_spec, scal_spec]
    if want_loss:
        out_shape.append(jax.ShapeDtypeStruct((padded_rows, LANES), jnp.float32))
        out_specs.append(tile_spec)

    # TODO(synk): for v7x (2 TensorCores) the scalar accumulators could be
    # emitted as per-block partial sums so the grid axis can be "parallel".
    outs = pl.pallas_call(
        functools.partial(_bce_stats_kernel, total),
        out_shape=tuple(out_shape),
        grid_spec=pltpu.PrefetchScalarGridSpec(
            num_scalar_prefetch=0,
            grid=grid,
            in_specs=(tile_spec, tile_spec),
            out_specs=tuple(out_specs),
        ),
        compiler_params=pltpu.CompilerParams(
            dimension_semantics=("arbitrary",)),
    )(pred2d, gt2d)

    neg2d, pos_sum, pos_cnt = outs[0], outs[1][0, 0], outs[2][0, 0]
    loss2d = outs[3] if want_loss else None
    return neg2d, pos_sum, pos_cnt, loss2d


# ----------------------------------------------------------------------------
# Kernel 2: sum of the last k elements of an ascending-sorted array
#   (== sum of top-k), with dynamic k passed via scalar prefetch.
#   The index_map is clamped with k so tiles before the cutoff never touch HBM.
# ----------------------------------------------------------------------------
def _topk_sum_kernel(total_padded, tile_elems, num_tiles,
                     k_ref, sorted_ref, out_ref):
    i = pl.program_id(0)

    @pl.when(i == 0)
    def _():
        out_ref[...] = jnp.zeros_like(out_ref)

    start = total_padded - k_ref[0]            # first flat index of the top-k suffix
    first_blk = jnp.minimum(lax.div(start, jnp.int32(tile_elems)),
                            jnp.int32(num_tiles - 1))

    # Tiles before `first_blk` are never fetched (the index_map clamps to
    # first_blk, so the same VMEM block is reused) and must not be re-summed.
    @pl.when(i >= first_blk)
    def _():
        tile = sorted_ref[...]
        rows, cols = tile.shape
        gidx = (i * rows * cols
                + lax.broadcasted_iota(jnp.int32, (rows, cols), 0) * cols
                + lax.broadcasted_iota(jnp.int32, (rows, cols), 1))
        out_ref[...] += jnp.sum(jnp.where(gidx >= start, tile, 0.0),
                                keepdims=True)


def _topk_sum(sorted2d, k, tile_rows):
    padded_rows = sorted2d.shape[0]
    num_tiles = padded_rows // tile_rows
    tile_elems = tile_rows * LANES
    total_padded = padded_rows * LANES

    def sorted_index_map(i, k_ref):
        start = total_padded - k_ref[0]
        first_blk = jnp.minimum(lax.div(start, jnp.int32(tile_elems)),
                                jnp.int32(num_tiles - 1))
        return (jnp.maximum(i, first_blk), 0)

    out = pl.pallas_call(
        functools.partial(_topk_sum_kernel, total_padded, tile_elems, num_tiles),
        out_shape=jax.ShapeDtypeStruct((1, 1), jnp.float32),
        grid_spec=pltpu.PrefetchScalarGridSpec(
            num_scalar_prefetch=1,
            grid=(num_tiles,),
            in_specs=(pl.BlockSpec((tile_rows, LANES), sorted_index_map),),
            out_specs=pl.BlockSpec((1, 1), lambda i, k_ref: (0, 0)),
        ),
        compiler_params=pltpu.CompilerParams(
            dimension_semantics=("arbitrary",)),
    )(k.reshape(1).astype(jnp.int32), sorted2d)
    return out[0, 0]


@functools.partial(jax.jit, static_argnames=("return_origin",))
def balance_cross_entropy_loss(pred, gt, return_origin=False):
    """JAX/Pallas equivalent of BalanceCrossEntropyLoss.forward (ratio=3, eps=1e-6)."""
    n, h, w = gt.shape
    total = n * h * w
    tile_rows, padded_rows = _choose_tiling(total)

    pred2d = _pad_to(pred.reshape(-1).astype(jnp.float32), padded_rows)
    gt2d = _pad_to(gt.reshape(-1).astype(jnp.float32), padded_rows)

    neg2d, pos_sum, pos_cnt, loss2d = _bce_stats(
        pred2d, gt2d, total, tile_rows, return_origin)

    # negative_count = min(int(total - pos), int(pos * ratio))
    neg_cnt = jnp.minimum(jnp.floor(total - pos_cnt),
                          jnp.floor(pos_cnt * NEG_RATIO)).astype(jnp.int32)

    # TODO(synk): the top-k selection still relies on a full XLA sort (ascending,
    # so no reverse pass); an in-kernel radix-select/histogram threshold would
    # remove the O(n log n) sort, but there is no clean Pallas TPU sort primitive.
    sorted2d = jnp.sort(neg2d.reshape(-1)).reshape(padded_rows, LANES)
    neg_sum = _topk_sum(sorted2d, neg_cnt, tile_rows)

    balance = (pos_sum + neg_sum) / (pos_cnt + neg_cnt.astype(jnp.float32) + EPS)
    if return_origin:
        loss_map = loss2d.reshape(-1)[:total].reshape(n, h, w)
        return balance, loss_map
    return balance


def _reference(pred, gt):
    """Pure-JAX reference (same algorithm as the PyTorch module)."""
    mask = (gt > 0).astype(jnp.float32)
    pos_cnt = mask.sum()
    total = pred.size
    neg_cnt = jnp.minimum(jnp.floor(total - pos_cnt), jnp.floor(pos_cnt * NEG_RATIO))
    loss = jnp.maximum(pred, 0.0) - pred * gt + jnp.log(1.0 + jnp.exp(-jnp.abs(pred)))
    pos_sum = (loss * mask).sum()
    neg = (loss * (1.0 - mask)).reshape(-1)
    neg_sorted = jnp.sort(neg)[::-1]
    idx = jnp.arange(neg_sorted.shape[0])
    neg_sum = jnp.sum(jnp.where(idx < neg_cnt, neg_sorted, 0.0))
    return (pos_sum + neg_sum) / (pos_cnt + neg_cnt + EPS)


if __name__ == "__main__":
    key = jax.random.PRNGKey(0)
    kp, kg = jax.random.split(key)
    N, H, W = 2, 16, 16
    pred = jax.random.normal(kp, (N, H, W), dtype=jnp.float32)
    gt = (jax.random.uniform(kg, (N, H, W)) > 0.7).astype(jnp.float32)

    out = jax.block_until_ready(balance_cross_entropy_loss(pred, gt))
    ref = jax.block_until_ready(_reference(pred, gt))
    assert jnp.abs(out - ref) < 1e-4, (out, ref)

    # Also exercise the return_origin=True variant (extra loss-map output).
    out2, loss_map = balance_cross_entropy_loss(pred, gt, return_origin=True)
    jax.block_until_ready((out2, loss_map))
    assert loss_map.shape == (N, H, W)
    assert jnp.abs(out2 - ref) < 1e-4, (out2, ref)

    print("KERNEL_OK")
</pallas_src>

<mosaic_0001>
module attributes {stable_mosaic.version = 11 : i64} {
  func.func @_bce_stats_kernel(%arg0: i32, %arg1: memref<8x128xf32, #tpu.memory_space<vmem>>, %arg2: memref<8x128xf32, #tpu.memory_space<vmem>>, %arg3: memref<8x128xf32, #tpu.memory_space<vmem>>, %arg4: memref<1x1xf32, #tpu.memory_space<vmem>>, %arg5: memref<1x1xf32, #tpu.memory_space<vmem>>) attributes {dimension_semantics = [#tpu.dimension_semantics<arbitrary>], iteration_bounds = array<i64: 1>, scalar_prefetch = 0 : i64, scratch_operands = 0 : i64, tpu.core_type = #tpu.core_type<tc>, window_params = [{transform_indices = @transform_0, window_bounds = array<i64: 8, 128>}, {transform_indices = @transform_1, window_bounds = array<i64: 8, 128>}, {transform_indices = @transform_2, window_bounds = array<i64: 8, 128>}, {pipeline_mode = #tpu.pipeline_mode<synchronous>, transform_indices = @transform_3, window_bounds = array<i64: 1, 1>}, {pipeline_mode = #tpu.pipeline_mode<synchronous>, transform_indices = @transform_4, window_bounds = array<i64: 1, 1>}]} {
    %c0_i32 = arith.constant 0 : i32
    %0 = arith.cmpi eq, %arg0, %c0_i32 : i32
    %1 = arith.extui %0 : i1 to i32
    %c0_i32_0 = arith.constant 0 : i32
    %2 = arith.cmpi ne, %1, %c0_i32_0 : i32
    scf.if %2 {
      %cst_23 = arith.constant 0.000000e+00 : f32
      %57 = vector.broadcast %cst_23 : f32 to vector<1x1xf32>
      %c0_24 = arith.constant 0 : index
      %c0_25 = arith.constant 0 : index
      %58 = vector.load %arg4[%c0_24, %c0_25] : memref<1x1xf32, #tpu.memory_space<vmem>>, vector<1x1xf32>
      tpu.vector_store %arg4[%c0_24, %c0_25], %57 {strides = array<i32>} : memref<1x1xf32, #tpu.memory_space<vmem>>, vector<1x1xf32>,
      %cst_26 = arith.constant 0.000000e+00 : f32
      %59 = vector.broadcast %cst_26 : f32 to vector<1x1xf32>
      %c0_27 = arith.constant 0 : index
      %c0_28 = arith.constant 0 : index
      %60 = vector.load %arg5[%c0_27, %c0_28] : memref<1x1xf32, #tpu.memory_space<vmem>>, vector<1x1xf32>
      tpu.vector_store %arg5[%c0_27, %c0_28], %59 {strides = array<i32>} : memref<1x1xf32, #tpu.memory_space<vmem>>, vector<1x1xf32>,
    } else {
    }
    %c0 = arith.constant 0 : index
    %c0_1 = arith.constant 0 : index
    %3 = vector.load %arg1[%c0, %c0_1] : memref<8x128xf32, #tpu.memory_space<vmem>>, vector<8x128xf32>
    %c0_2 = arith.constant 0 : index
    %c0_3 = arith.constant 0 : index
    %4 = vector.load %arg2[%c0_2, %c0_3] : memref<8x128xf32, #tpu.memory_space<vmem>>, vector<8x128xf32>
    %c8_i32 = arith.constant 8 : i32
    %5 = arith.muli %arg0, %c8_i32 : i32
    %c128_i32 = arith.constant 128 : i32
    %6 = arith.muli %5, %c128_i32 : i32
    %7 = tpu.iota {dimensions = array<i32: 0>} : vector<8x128xi32>
    %c128_i32_4 = arith.constant 128 : i32
    %8 = vector.broadcast %c128_i32_4 : i32 to vector<8x128xi32>
    %9 = arith.muli %7, %8 : vector<8x128xi32>
    %10 = vector.broadcast %6 : i32 to vector<8x128xi32>
    %11 = arith.addi %10, %9 : vector<8x128xi32>
    %12 = tpu.iota {dimensions = array<i32: 1>} : vector<8x128xi32>
    %13 = arith.addi %11, %12 : vector<8x128xi32>
    %c512_i32 = arith.constant 512 : i32
    %14 = vector.broadcast %c512_i32 : i32 to vector<8x128xi32>
    %15 = arith.cmpi slt, %13, %14 : vector<8x128xi32>
    %cst = arith.constant 0.000000e+00 : f32
    %16 = vector.broadcast %cst : f32 to vector<8x128xf32>
    %17 = arith.maximumf %3, %16 : vector<8x128xf32>
    %18 = arith.mulf %3, %4 : vector<8x128xf32>
    %19 = arith.subf %17, %18 : vector<8x128xf32>
    %20 = math.absf %3 : vector<8x128xf32>
    %cst_5 = arith.constant 0.000000e+00 : f32
    %21 = vector.broadcast %cst_5 : f32 to vector<8x128xf32>
    %22 = arith.subf %21, %20 : vector<8x128xf32>
    %23 = math.exp %22 : vector<8x128xf32>
    %cst_6 = arith.constant 1.000000e+00 : f32
    %24 = vector.broadcast %cst_6 : f32 to vector<8x128xf32>
    %25 = arith.addf %24, %23 : vector<8x128xf32>
    %26 = math.log %25 : vector<8x128xf32>
    %27 = arith.addf %19, %26 : vector<8x128xf32>
    %cst_7 = arith.constant 0.000000e+00 : f32
    %28 = vector.broadcast %cst_7 : f32 to vector<8x128xf32>
    %29 = arith.cmpf ogt, %4, %28 : vector<8x128xf32>
    %30 = arith.andi %15, %29 : vector<8x128xi1>
    %cst_8 = arith.constant 0.000000e+00 : f32
    %31 = vector.broadcast %cst_8 : f32 to vector<8x128xf32>
    %32 = arith.cmpf ole, %4, %31 : vector<8x128xf32>
    %33 = arith.andi %15, %32 : vector<8x128xi1>
    %cst_9 = arith.constant 0.000000e+00 : f32
    %34 = vector.broadcast %cst_9 : f32 to vector<8x128xf32>
    %35 = arith.select %30, %27, %34 : vector<8x128xi1>, vector<8x128xf32>
    %cst_10 = arith.constant 0.000000e+00 : f32
    %36 = vector.broadcast %cst_10 : f32 to vector<8x128xf32>
    %37 = arith.select %33, %27, %36 : vector<8x128xi1>, vector<8x128xf32>
    %c0_11 = arith.constant 0 : index
    %c0_12 = arith.constant 0 : index
    %38 = vector.load %arg3[%c0_11, %c0_12] : memref<8x128xf32, #tpu.memory_space<vmem>>, vector<8x128xf32>
    tpu.vector_store %arg3[%c0_11, %c0_12], %37 {strides = array<i32>} : memref<8x128xf32, #tpu.memory_space<vmem>>, vector<8x128xf32>,
    %c0_13 = arith.constant 0 : index
    %c0_14 = arith.constant 0 : index
    %39 = vector.load %arg4[%c0_13, %c0_14] : memref<1x1xf32, #tpu.memory_space<vmem>>, vector<1x1xf32>
    %40 = vector.shape_cast %35 : vector<8x128xf32> to vector<1x8x128xf32>
    %cst_15 = arith.constant dense<0.000000e+00> : vector<1xf32>
    %41 = vector.multi_reduction <add>, %40, %cst_15 [1, 2] : vector<1x8x128xf32> to vector<1xf32>
    %42 = vector.shape_cast %41 : vector<1xf32> to vector<1x1x1xf32>
    %43 = vector.extract %42[0, 0, 0] : f32 from vector<1x1x1xf32>
    %44 = vector.broadcast %43 : f32 to vector<1x1xf32>
    %45 = arith.addf %39, %44 : vector<1x1xf32>
    %c0_16 = arith.constant 0 : index
    %c0_17 = arith.constant 0 : index
    %46 = vector.load %arg4[%c0_16, %c0_17] : memref<1x1xf32, #tpu.memory_space<vmem>>, vector<1x1xf32>
    tpu.vector_store %arg4[%c0_16, %c0_17], %45 {strides = array<i32>} : memref<1x1xf32, #tpu.memory_space<vmem>>, vector<1x1xf32>,
    %c0_18 = arith.constant 0 : index
    %c0_19 = arith.constant 0 : index
    %47 = vector.load %arg5[%c0_18, %c0_19] : memref<1x1xf32, #tpu.memory_space<vmem>>, vector<1x1xf32>
    %48 = arith.extui %30 : vector<8x128xi1> to vector<8x128xi32>
    %49 = arith.sitofp %48 : vector<8x128xi32> to vector<8x128xf32>
    %50 = vector.shape_cast %49 : vector<8x128xf32> to vector<1x8x128xf32>
    %cst_20 = arith.constant dense<0.000000e+00> : vector<1xf32>
    %51 = vector.multi_reduction <add>, %50, %cst_20 [1, 2] : vector<1x8x128xf32> to vector<1xf32>
    %52 = vector.shape_cast %51 : vector<1xf32> to vector<1x1x1xf32>
    %53 = vector.extract %52[0, 0, 0] : f32 from vector<1x1x1xf32>
    %54 = vector.broadcast %53 : f32 to vector<1x1xf32>
    %55 = arith.addf %47, %54 : vector<1x1xf32>
    %c0_21 = arith.constant 0 : index
    %c0_22 = arith.constant 0 : index
    %56 = vector.load %arg5[%c0_21, %c0_22] : memref<1x1xf32, #tpu.memory_space<vmem>>, vector<1x1xf32>
    tpu.vector_store %arg5[%c0_21, %c0_22], %55 {strides = array<i32>} : memref<1x1xf32, #tpu.memory_space<vmem>>, vector<1x1xf32>,
    return
  }
  func.func @transform_0(%arg0: i32) -> (i32, i32) {
    %c0_i32 = arith.constant 0 : i32
    %c0_i32_0 = arith.constant 0 : i32
    return %arg0, %c0_i32 : i32, i32
  }
  func.func @transform_1(%arg0: i32) -> (i32, i32) {
    %c0_i32 = arith.constant 0 : i32
    %c0_i32_0 = arith.constant 0 : i32
    return %arg0, %c0_i32 : i32, i32
  }
  func.func @transform_2(%arg0: i32) -> (i32, i32) {
    %c0_i32 = arith.constant 0 : i32
    %c0_i32_0 = arith.constant 0 : i32
    return %arg0, %c0_i32 : i32, i32
  }
  func.func @transform_3(%arg0: i32) -> (i32, i32) {
    %c0_i32 = arith.constant 0 : i32
    %c0_i32_0 = arith.constant 0 : i32
    %c0_i32_1 = arith.constant 0 : i32
    return %c0_i32, %c0_i32_0 : i32, i32
  }
  func.func @transform_4(%arg0: i32) -> (i32, i32) {
    %c0_i32 = arith.constant 0 : i32
    %c0_i32_0 = arith.constant 0 : i32
    %c0_i32_1 = arith.constant 0 : i32
    return %c0_i32, %c0_i32_0 : i32, i32
  }
}

module attributes {stable_mosaic.version = 11 : i64} {
  func.func @_topk_sum_kernel(%arg0: i32, %arg1: memref<1xi32, #tpu.memory_space<smem>>, %arg2: memref<8x128xf32, #tpu.memory_space<vmem>>, %arg3: memref<1x1xf32, #tpu.memory_space<vmem>>) attributes {dimension_semantics = [#tpu.dimension_semantics<arbitrary>], iteration_bounds = array<i64: 1>, scalar_prefetch = 1 : i64, scratch_operands = 0 : i64, tpu.core_type = #tpu.core_type<tc>, window_params = [{transform_indices = @transform_0, window_bounds = array<i64: 8, 128>}, {pipeline_mode = #tpu.pipeline_mode<synchronous>, transform_indices = @transform_1, window_bounds = array<i64: 1, 1>}]} {
    %c0_i32 = arith.constant 0 : i32
    %0 = arith.cmpi eq, %arg0, %c0_i32 : i32
    %1 = arith.extui %0 : i1 to i32
    %c0_i32_0 = arith.constant 0 : i32
    %2 = arith.cmpi ne, %1, %c0_i32_0 : i32
    scf.if %2 {
      %cst = arith.constant 0.000000e+00 : f32
      %10 = vector.broadcast %cst : f32 to vector<1x1xf32>
      %c0_4 = arith.constant 0 : index
      %c0_5 = arith.constant 0 : index
      %11 = vector.load %arg3[%c0_4, %c0_5] : memref<1x1xf32, #tpu.memory_space<vmem>>, vector<1x1xf32>
      tpu.vector_store %arg3[%c0_4, %c0_5], %10 {strides = array<i32>} : memref<1x1xf32, #tpu.memory_space<vmem>>, vector<1x1xf32>,
    } else {
    }
    %c0 = arith.constant 0 : index
    %3 = memref.load %arg1[%c0] : memref<1xi32, #tpu.memory_space<smem>>
    %c1024_i32 = arith.constant 1024 : i32
    %4 = arith.subi %c1024_i32, %3 : i32
    %c1024_i32_1 = arith.constant 1024 : i32
    %5 = arith.divsi %4, %c1024_i32_1 : i32
    %c0_i32_2 = arith.constant 0 : i32
    %6 = arith.minsi %5, %c0_i32_2 : i32
    %7 = arith.cmpi sge, %arg0, %6 : i32
    %8 = arith.extui %7 : i1 to i32
    %c0_i32_3 = arith.constant 0 : i32
    %9 = arith.cmpi ne, %8, %c0_i32_3 : i32
    scf.if %9 {
      %c0_4 = arith.constant 0 : index
      %c0_5 = arith.constant 0 : index
      %10 = vector.load %arg2[%c0_4, %c0_5] : memref<8x128xf32, #tpu.memory_space<vmem>>, vector<8x128xf32>
      %c8_i32 = arith.constant 8 : i32
      %11 = arith.muli %arg0, %c8_i32 : i32
      %c128_i32 = arith.constant 128 : i32
      %12 = arith.muli %11, %c128_i32 : i32
      %13 = tpu.iota {dimensions = array<i32: 0>} : vector<8x128xi32>
      %c128_i32_6 = arith.constant 128 : i32
      %14 = vector.broadcast %c128_i32_6 : i32 to vector<8x128xi32>
      %15 = arith.muli %13, %14 : vector<8x128xi32>
      %16 = vector.broadcast %12 : i32 to vector<8x128xi32>
      %17 = arith.addi %16, %15 : vector<8x128xi32>
      %18 = tpu.iota {dimensions = array<i32: 1>} : vector<8x128xi32>
      %19 = arith.addi %17, %18 : vector<8x128xi32>
      %c0_7 = arith.constant 0 : index
      %c0_8 = arith.constant 0 : index
      %20 = vector.load %arg3[%c0_7, %c0_8] : memref<1x1xf32, #tpu.memory_space<vmem>>, vector<1x1xf32>
      %21 = vector.broadcast %4 : i32 to vector<8x128xi32>
      %22 = arith.cmpi sge, %19, %21 : vector<8x128xi32>
      %cst = arith.constant 0.000000e+00 : f32
      %23 = vector.broadcast %cst : f32 to vector<8x128xf32>
      %24 = arith.select %22, %10, %23 : vector<8x128xi1>, vector<8x128xf32>
      %25 = vector.shape_cast %24 : vector<8x128xf32> to vector<1x8x128xf32>
      %cst_9 = arith.constant dense<0.000000e+00> : vector<1xf32>
      %26 = vector.multi_reduction <add>, %25, %cst_9 [1, 2] : vector<1x8x128xf32> to vector<1xf32>
      %27 = vector.shape_cast %26 : vector<1xf32> to vector<1x1x1xf32>
      %28 = vector.extract %27[0, 0, 0] : f32 from vector<1x1x1xf32>
      %29 = vector.broadcast %28 : f32 to vector<1x1xf32>
      %30 = arith.addf %20, %29 : vector<1x1xf32>
      %c0_10 = arith.constant 0 : index
      %c0_11 = arith.constant 0 : index
      %31 = vector.load %arg3[%c0_10, %c0_11] : memref<1x1xf32, #tpu.memory_space<vmem>>, vector<1x1xf32>
      tpu.vector_store %arg3[%c0_10, %c0_11], %30 {strides = array<i32>} : memref<1x1xf32, #tpu.memory_space<vmem>>, vector<1x1xf32>,
    } else {
    }
    return
  }
  func.func @transform_0(%arg0: i32, %arg1: memref<1xi32, #tpu.memory_space<smem>>) -> (i32, i32) {
    %c0 = arith.constant 0 : index
    %0 = memref.load %arg1[%c0] : memref<1xi32, #tpu.memory_space<smem>>
    %c1024_i32 = arith.constant 1024 : i32
    %1 = arith.subi %c1024_i32, %0 : i32
    %c1024_i32_0 = arith.constant 1024 : i32
    %2 = arith.divsi %1, %c1024_i32_0 : i32
    %c0_i32 = arith.constant 0 : i32
    %3 = arith.minsi %2, %c0_i32 : i32
    %4 = arith.maxsi %arg0, %3 : i32
    %c0_i32_1 = arith.constant 0 : i32
    %c0_i32_2 = arith.constant 0 : i32
    return %4, %c0_i32_1 : i32, i32
  }
  func.func @transform_1(%arg0: i32, %arg1: memref<1xi32, #tpu.memory_space<smem>>) -> (i32, i32) {
    %c0_i32 = arith.constant 0 : i32
    %c0_i32_0 = arith.constant 0 : i32
    %c0_i32_1 = arith.constant 0 : i32
    return %c0_i32, %c0_i32_0 : i32, i32
  }
}

</mosaic_0001>

<bundles_post_ra>
// kernel: balance_cross_entropy_loss.3
= control target key start
LH: loop header
LB: loop body
LE: loop exit
PB: predicated region body
PF: predicated region fallthrough
CT: control target
= control target key end

     0   :  { %v105_v0 = vlaneseq  ;;  %s228_s0 = inlined_call_operand.<no memory space> [shape: s32[1], index: 0, kind: input, shape index: {}]   ;;  %s229_s1 = inlined_call_operand.vmem [shape: f32[8,128], index: 1, kind: input, shape index: {}]   ;;  %s230_s2 = inlined_call_operand.hbm [shape: f32[1,1], index: 2, kind: output, shape index: {}]  }
   0x1   :  { %8 = vsyncpa [#allocation5], 0  ;;  %s90_s11 = ssub.s32 1024, %s228_s0  ;;  %v103_v5 = vld [vmem:[%s229_s1] sm:$0xff]  ;;  %vm87_vm1 = vcmask 0   ;;  %v200_v8 = vmov 0.0  }
   0x2   :  { %v106_v1 = vshrl.u32 %v105_v0, 7  ;;  %v111_v2 = vand.u32 127, %v105_v0  ;;  %v114_v4 = vstv %s90_s11  ;;  %88 = vst.msk [vmem:[#allocation4] sm:$0x1] %vm87_vm1, %v200_v8  ;;  %s201_s0 = smov [#allocation4]  }
   0x3   :  { %s136_s14 = sshll.u32 %s201_s0, 4  ;;  %s137_s14 = int_to_ptr.vmem [resolvable:$true] %s136_s14 }
   0x4   :  { %v107_v3 = vmul.u32 128, %v106_v1  ;;  %s178_s15 = scalar_lea.vmem %s137_s14, 16  ;;  %s182_s16 = scalar_lea.vmem %s137_s14, 32 }
   0x5   :  { %p179_p0 = scmp.ne.s32.totalorder %s137_s14, %s178_s15  ;;  %p183_p1 = scmp.lt.s32.totalorder %s137_s14, %s137_s14 }
   0x6   :  { %v112_v6 = vadd.s32 %v111_v2, %v107_v3  ;;  %p184_p2 = scmp.lt.s32.totalorder %s182_s16, %s178_s15 }
   0x8   :  { %vm115_vm0 = vcmp.ge.s32.totalorder %v112_v6, %v114_v4  ;;  %p185_p3 = por %p184_p2, %p183_p1 }
   0x9   :  { %v116_v7 = vsel %vm115_vm0, %v103_v5, 0.0  ;;  %v113_v16 = vld [vmem:[#allocation4] sm:$0x1] }
   0xa   :  { %117 = vadd.xlane.f32.xlu0 %v116_v7  ;;  %p186_p4 = pnand %p185_p3, %p179_p0 }
  0x93   :  { %v118_v9 = vpop.xlane.xlu0 %117 }
  0x94   :  { %v119_v10 = vrot.slane %v118_v9, 4 }
  0x96   :  { %v120_v11 = vadd.f32 %v119_v10, %v118_v9 }
  0x98   :  { %v121_v12 = vrot.slane %v120_v11, 2 }
  0x9a   :  { %v122_v13 = vadd.f32 %v121_v12, %v120_v11 }
  0x9c   :  { %v123_v14 = vrot.slane %v122_v13, 1 }
  0x9e   :  { %v124_v15 = vadd.f32 %v123_v14, %v122_v13 }
  0xa0   :  { %174 = vpush %v124_v15 }
  0xd1   :  { %s175_s1 = spop %174 }
  0xd2   :  { %v126_v17 = vstv %s175_s1 }
  0xd3   :  { %v127_v18 = vadd.f32 %v126_v17, %v113_v16 }
  0xd5   :  { %129 = vst.msk [vmem:[#allocation4] sm:$0x1] %vm87_vm1, %v127_v18 }
  0xd6   :  { %189 = shalt.err (!%p186_p4)
}
  0xd7   :  { %139 = dma.vmem_to_hbm [thread:$0]  %s137_s14, 16, %s230_s2, [#allocation5]  }
  0xd8   :  { %198 = dma.done.wait [#allocation5], 16  }
  0xd9   :  { %199 = vsyncadd [#allocation5], 4294967280 }
  0xda   :  { %143 = vsyncpa [#allocation5], 1 }

// kernel: balance_cross_entropy_loss.2
= control target key start
LH: loop header
LB: loop body
LE: loop exit
PB: predicated region body
PF: predicated region fallthrough
CT: control target
= control target key end

     0   :  { %10 = vsyncpa [#allocation3], 0  ;;  %vm20_vm0 = vcmask 0   ;;  %s217_s0 = inlined_call_operand.vmem [shape: f32[8,128], index: 0, kind: input, shape index: {}]   ;;  %s218_s1 = inlined_call_operand.vmem [shape: f32[8,128], index: 1, kind: input, shape index: {}]   ;;  %s219_s2 = inlined_call_operand.vmem [shape: f32[8,128], index: 2, kind: output, shape index: {0}]   ;;  %s220_s3 = inlined_call_operand.hbm [shape: f32[1,1], index: 3, kind: output, shape index: {1}]   ;;  %s221_s4 = inlined_call_operand.hbm [shape: f32[1,1], index: 4, kind: output, shape index: {2}]  }
   0x1   :  { %v23_v0 = vld [vmem:[%s217_s0] sm:$0xff] }
   0x2   :  { %11 = vsyncpa [#allocation5], 0  ;;  %v38_v1 = vand.u32 2147483647, %v23_v0  ;;  %v170_v2 = vmov 0.0   ;;  %v26_v5 = vlaneseq  ;;  %v24_v11 = vld [vmem:[%s218_s1] sm:$0xff] }
   0x3   :  { %21 = vst.msk [vmem:[#allocation2] sm:$0x1] %vm20_vm0, %v170_v2  ;;  %22 = vst.msk [vmem:[#allocation4] sm:$0x1] %vm20_vm0, %v170_v2  ;;  %v35_v13 = vmax.f32 %v23_v0, 0.0  ;;  %v36_v14 = vmul.f32 %v24_v11, %v23_v0  ;;  %vm46_vm2 = vcmp.gt.f32.partialorder %v24_v11, 0.0 }
   0x4   :  { %v39_v3 = vsub.f32 0.0, %v38_v1  ;;  %v27_v8 = vshrl.u32 %v26_v5, 7  ;;  %v32_v10 = vand.u32 127, %v26_v5  ;;  %vm48_vm3 = vcmp.le.f32.partialorder %v24_v11, 0.0  ;;  %s171_s1 = smov [#allocation2]   ;;  %s172_s21 = smov [#allocation4]  }
   0x5   :  { %v37_v15 = vsub.f32 %v35_v13, %v36_v14  ;;  %s100_s22 = sshll.u32 %s172_s21, 4  ;;  %s101_s22 = int_to_ptr.vmem [resolvable:$true] %s100_s22 }
   0x6   :  { %v40_v4 = vmul.f32 1.442695, %v39_v3  ;;  %v28_v9 = vmul.u32 128, %v27_v8 }
   0x8   :  { %122 = vpow2.f32 %v40_v4  ;;  %v33_v12 = vadd.s32 %v32_v10, %v28_v9 }
   0xa   :  { %vm34_vm1 = vcmp.lt.s32.totalorder %v33_v12, 512  ;;  %v53_v36 = vld [vmem:[#allocation2] sm:$0x1]  ;;  %v67_v39 = vld [vmem:[#allocation4] sm:$0x1] }
   0xb   :  { %vm47_vm4 = vmand %vm34_vm1, %vm46_vm2 }
   0xc   :  { %vm49_vm5 = vmand %vm34_vm1, %vm48_vm3  ;;  %v114_v21 = vsel %vm47_vm4, 1.0, %v170_v2 }
  0x15   :  { %v123_v6 = vpop.eup %122 }
  0x16   :  { %v42_v7 = vadd.f32 1.0, %v123_v6 }
  0x18   :  { %124 = vlog2.f32 %v42_v7 }
  0x25   :  { %v125_v16 = vpop.eup %124 }
  0x26   :  { %v44_v17 = vmul.f32 0.6931472, %v125_v16 }
  0x28   :  { %v45_v18 = vadd.f32 %v44_v17, %v37_v15 }
  0x2a   :  { %v50_v19 = vsel %vm47_vm4, %v45_v18, 0.0  ;;  %v51_v20 = vsel %vm49_vm5, %v45_v18, 0.0 }
  0x2b   :  { %52 = vst [vmem:[%s219_s2] sm:$0xff] %v51_v20  ;;  %54 = vadd.xlane.f32.xlu0 %v50_v19  ;;  %s90_s2 = sshll.u32 %s171_s1, 4  ;;  %s91_s2 = int_to_ptr.vmem [resolvable:$true] %s90_s2 }
  0x2c   :  { %s126_s24 = scalar_lea.vmem %s91_s2, 16  ;;  %s130_s25 = scalar_lea.vmem %s91_s2, 32 }
  0x2d   :  { %p127_p0 = scmp.ne.s32.totalorder %s91_s2, %s126_s24  ;;  %p131_p1 = scmp.lt.s32.totalorder %s91_s2, %s91_s2 }
  0x2e   :  { %p132_p2 = scmp.lt.s32.totalorder %s130_s25, %s126_s24 }
  0x2f   :  { %70 = vadd.xlane.f32.xlu0 %v114_v21 }
  0x30   :  { %p133_p3 = por %p132_p2, %p131_p1 }
  0x32   :  { %p134_p4 = pnand %p133_p3, %p127_p0 }
  0xb4   :  { %v55_v22 = vpop.xlane.xlu0 %54 }
  0xb5   :  { %v56_v23 = vrot.slane %v55_v22, 4 }
  0xb7   :  { %v57_v24 = vadd.f32 %v56_v23, %v55_v22 }
  0xb8   :  { %v71_v25 = vpop.xlane.xlu0 %70 }
  0xb9   :  { %v58_v26 = vrot.slane %v57_v24, 2  ;;  %v72_v27 = vrot.slane %v71_v25, 4 }
  0xbb   :  { %v73_v28 = vadd.f32 %v72_v27, %v71_v25  ;;  %v59_v29 = vadd.f32 %v58_v26, %v57_v24 }
  0xbd   :  { %v74_v30 = vrot.slane %v73_v28, 2  ;;  %v60_v31 = vrot.slane %v59_v29, 1 }
  0xbf   :  { %v75_v32 = vadd.f32 %v74_v30, %v73_v28  ;;  %v61_v33 = vadd.f32 %v60_v31, %v59_v29 }
  0xc1   :  { %115 = vpush %v61_v33  ;;  %v76_v34 = vrot.slane %v75_v32, 1 }
  0xc3   :  { %v77_v35 = vadd.f32 %v76_v34, %v75_v32 }
  0xc5   :  { %117 = vpush %v77_v35 }
  0xf2   :  { %s116_s20 = spop %115 }
  0xf3   :  { %v63_v37 = vstv %s116_s20 }
  0xf4   :  { %v64_v38 = vadd.f32 %v63_v37, %v53_v36 }
  0xf6   :  { %66 = vst.msk [vmem:[#allocation2] sm:$0x1] %vm20_vm0, %v64_v38  ;;  %s118_s23 = spop %117 }
  0xf7   :  { %v79_v40 = vstv %s118_s23 }
  0xf8   :  { %137 = shalt.err (!%p134_p4)
}
  0xf9   :  { %93 = dma.vmem_to_hbm [thread:$0]  %s91_s2, 16, %s220_s3, [#allocation3]   ;;  %v80_v41 = vadd.f32 %v79_v40, %v67_v39 }
  0xfa   :  { %s146_s28 = scalar_lea.vmem %s101_s22, 16  ;;  %s150_s29 = scalar_lea.vmem %s101_s22, 32 }
  0xfb   :  { %81 = vst.msk [vmem:[#allocation4] sm:$0x1] %vm20_vm0, %v80_v41  ;;  %p147_p5 = scmp.ne.s32.totalorder %s101_s22, %s146_s28  ;;  %p151_p6 = scmp.lt.s32.totalorder %s101_s22, %s101_s22 }
  0xfc   :  { %p152_p7 = scmp.lt.s32.totalorder %s150_s29, %s146_s28 }
  0xfe   :  { %p153_p8 = por %p152_p7, %p151_p6 }
 0x100   :  { %p154_p9 = pnand %p153_p8, %p147_p5 }
 0x102   :  { %157 = shalt.err (!%p154_p9)
}
 0x103   :  { %103 = dma.vmem_to_hbm [thread:$0]  %s101_s22, 16, %s221_s4, [#allocation5]  }
 0x104   :  { %166 = dma.done.wait [#allocation3], 16  }
 0x105   :  { %167 = vsyncadd [#allocation3], 4294967280 }
 0x106   :  { %168 = dma.done.wait [#allocation5], 16  }
 0x107   :  { %169 = vsyncadd [#allocation5], 4294967280 }
 0x108   :  { %112 = vsyncpa [#allocation3], 1 }
 0x109   :  { %113 = vsyncpa [#allocation5], 1 }

</bundles_post_ra>
